<compile_context>
chip_gen: v7x
topology: tpu7x:2x2x1
jax: 0.10.0
libtpu: 0.0.40
codegen_flags: <defaults>
</compile_context>

<pallas_src>
import numpy as np
import jax
import jax.numpy as jnp
from jax.experimental import pallas as pl
from jax.experimental.pallas import tpu as pltpu


# ----------------------------------------------------------------------------
# Gaussian kernel + banded (reflect-padded) blur matrices
# ----------------------------------------------------------------------------
def _gauss_kernel1d(ksize: int, sigma: float) -> np.ndarray:
    # identical construction to torchvision.transforms.GaussianBlur
    x = np.linspace(-(ksize - 1) * 0.5, (ksize - 1) * 0.5, ksize)
    pdf = np.exp(-0.5 * (x / sigma) ** 2)
    return (pdf / pdf.sum()).astype(np.float32)


def _reflect_index(q: int, n: int) -> int:
    # np.pad / torch F.pad mode="reflect" (no edge repeat), valid for pad < n
    if q < 0:
        return -q
    if q > n - 1:
        return 2 * (n - 1) - q
    return q


def _banded_reflect_matrix(n: int, weights: np.ndarray) -> np.ndarray:
    """B[i, src] such that (B @ x)[i] == 1-D Gaussian blur of x with reflect pad."""
    k = len(weights)
    pad = k // 2
    assert pad < n, f"reflect padding requires pad ({pad}) < spatial size ({n})"
    B = np.zeros((n, n), dtype=np.float32)
    for i in range(n):
        for j in range(k):
            src = _reflect_index(i - pad + j, n)
            B[i, src] += float(weights[j])
    return B


# ----------------------------------------------------------------------------
# Pallas kernel: per-batch block -> blur (bf16 MXU) + squared-diff partial sums
# ----------------------------------------------------------------------------
def _make_blur_mse_kernel(C: int, H: int, W: int):
    fold_channels = (H % 8 == 0)  # (C,H,W)->(C*H,W) retile is free iff H % 8 == 0

    def kernel(cur_ref, init_ref, bv_ref, bh_ref, out_ref):
        x = cur_ref[0]        # (C, H, W) f32 current raster, this batch image
        tgt = init_ref[0]     # (C, H, W) f32 blurred-init target (single HBM copy)
        bv = bv_ref[...]      # (H, H) bf16 vertical blur + reflect pad, banded
        bh = bh_ref[...]      # (W, W) bf16 horizontal blur + reflect pad, banded

        # --- horizontal pass: channels folded into the matmul M dim ---------
        if fold_channels:
            x2d = x.reshape(C * H, W).astype(jnp.bfloat16)
            t = jnp.dot(x2d, bh, preferred_element_type=jnp.float32)  # (C*H, W) f32
            t = t.reshape(C, H, W).astype(jnp.bfloat16)
        else:
            t = jnp.stack([
                jnp.dot(x[c].astype(jnp.bfloat16), bh,
                        preferred_element_type=jnp.float32)
                for c in range(C)
            ]).astype(jnp.bfloat16)

        # --- vertical pass per channel + f32 diff^2 accumulation ------------
        sq = jnp.zeros((H, W), jnp.float32)
        for c in range(C):  # C is small (RGB); static unroll
            blurred = jnp.dot(bv, t[c], preferred_element_type=jnp.float32)
            d = blurred - tgt[c]          # f32 VPU math (no bf16 VALU on v5e)
            sq = sq + d * d

        # sublane-only reduce in-kernel; the wrapper's jnp.sum folds the lane axis.
        out_ref[...] = jnp.sum(sq, axis=0, keepdims=True)[None]

    return kernel


def _const_in_spec(block_shape, index_map, single_buffer: bool):
    """BlockSpec for a constant-index input.

    Requests a single pipeline buffer (double-buffering an input whose
    index_map never changes is pure VMEM waste on v7x's 64 MiB), degrading
    gracefully if this JAX version does not accept pipeline_mode.
    """
    if single_buffer and hasattr(pl, "Buffered"):
        try:
            return pl.BlockSpec(block_shape, index_map,
                                pipeline_mode=pl.Buffered(1))
        except TypeError:
            pass
    return pl.BlockSpec(block_shape, index_map)


def tone_fill_sq_sum(cur_raster, init_blurred, bv_bf16, bh_bf16):
    """Sum over (N,C,H,W) of (blur(cur) - init_blurred)^2 (target broadcast over N)."""
    N, C, H, W = cur_raster.shape
    kernel = _make_blur_mse_kernel(C, H, W)

    # VMEM budget for this block plan (double-buffered worst case) + headroom,
    # capped at v7x's 64 MiB physical VMEM.  Matters on v5e (16 MiB default).
    block_bytes = (
        2 * (C * H * W * 4)            # cur block (f32), double-buffered
        + 2 * (C * H * W * 4)          # init target block (worst case 2 bufs)
        + 2 * (H * H + W * W) * 2      # bf16 blur matrices (worst case 2 bufs)
        + 2 * (1 * W * 4)              # output partial row
    )
    vmem_limit = int(min(max(4 * block_bytes, 32 << 20), 64 << 20))

    def build(single_buffer_consts: bool):
        in_specs = [
            # current raster: one (C,H,W) block per batch image
            pl.BlockSpec((1, C, H, W), lambda n: (n, 0, 0, 0)),
            # blurred init target: single copy reused by every grid step
            _const_in_spec((1, C, H, W), lambda n: (0, 0, 0, 0), single_buffer_consts),
            # banded blur matrices (reflect pad folded in), bf16 for the MXU
            _const_in_spec((H, H), lambda n: (0, 0), single_buffer_consts),
            _const_in_spec((W, W), lambda n: (0, 0), single_buffer_consts),
        ]
        return pl.pallas_call(
            kernel,
            out_shape=jax.ShapeDtypeStruct((N, 1, W), jnp.float32),
            grid_spec=pltpu.PrefetchScalarGridSpec(
                num_scalar_prefetch=0,
                grid=(N,),
                in_specs=in_specs,
                out_specs=pl.BlockSpec((1, 1, W), lambda n: (n, 0, 0)),
            ),
            compiler_params=pltpu.CompilerParams(
                dimension_semantics=("parallel",),
                vmem_limit_bytes=vmem_limit),
        )

    try:
        out = build(True)(cur_raster, init_blurred, bv_bf16, bh_bf16)
    except Exception:
        # Fallback if Buffered(1) pipeline_mode is rejected by this JAX/Mosaic.
        out = build(False)(cur_raster, init_blurred, bv_bf16, bh_bf16)

    # per-block sublane-reduced partial rows -> total (tiny trailing reduction)
    return jnp.sum(out)


# ----------------------------------------------------------------------------
# Wrapper: ToneFillLoss forward
# ----------------------------------------------------------------------------
def gaussian_blur_banded_jax(img_nchw, bv_f32, bh_f32):
    """Plain-JAX f32 blur via the same banded matrices (used for set_image_init)."""
    t = jnp.einsum('ij,ncjw->nciw', bv_f32, img_nchw)
    return jnp.einsum('nciw,wk->ncik', t, bh_f32)


def tone_fill_loss(cur_raster, init_blurred, bv_bf16, bh_bf16,
                   dist_loss_weight, step=None):
    """Forward pass of ToneFillLoss.

    cur_raster:       (N, C, H, W) f32
    init_blurred:     (1, C, H, W) f32 (precomputed blur of the init image)
    bv_bf16, bh_bf16: banded blur matrices (H,H) / (W,W), bf16 for the MXU
    """
    N, C, H, W = cur_raster.shape
    sq_sum = tone_fill_sq_sum(cur_raster, init_blurred, bv_bf16, bh_bf16)
    # nn.MSELoss broadcasts the (1,C,H,W) target against (N,C,H,W) input
    mse = sq_sum / (N * C * H * W)

    if step is not None:
        # jnp.exp so a traced `step` under jit also works
        sched = dist_loss_weight * jnp.exp(-(1.0 / 5.0) * ((step - 300.0) / 20.0) ** 2)
    else:
        sched = dist_loss_weight
    return mse * sched


# ----------------------------------------------------------------------------
# Reference (plain JAX f32, pad + shifted-tap blur) for a sanity check
# ----------------------------------------------------------------------------
def _reference_loss(cur_raster, init_blurred, weights, dist_loss_weight, step):
    k = int(weights.shape[0])
    pad = k // 2
    N, C, H, W = cur_raster.shape
    x = jnp.pad(cur_raster, ((0, 0), (0, 0), (pad, pad), (pad, pad)), mode="reflect")
    tmp = sum(weights[j] * x[:, :, :, j:j + W] for j in range(k))
    blur = sum(weights[j] * tmp[:, :, j:j + H, :] for j in range(k))
    mse = jnp.mean((blur - init_blurred) ** 2)
    sched = dist_loss_weight * jnp.exp(-(1.0 / 5.0) * ((step - 300.0) / 20.0) ** 2)
    return mse * sched


if __name__ == "__main__":
    # cfg.loss.tone values (deterministic, in-script)
    dist_loss_weight = 0.5
    pixel_dist_kernel_blur = 5
    pixel_dist_sigma = 2.0

    N, C, H, W = 2, 3, 16, 16

    key = jax.random.PRNGKey(0)
    k1, k2 = jax.random.split(key)
    im_init_hwc = jax.random.uniform(k1, (H, W, C), dtype=jnp.float32)    # H,W,C init image
    cur_raster = jax.random.uniform(k2, (N, C, H, W), dtype=jnp.float32)  # NCHW raster

    weights_np = _gauss_kernel1d(pixel_dist_kernel_blur, pixel_dist_sigma)
    weights = jnp.asarray(weights_np)

    # banded blur matrices: blur(x) == Bv @ x @ Bh with reflect pad folded in
    bv_np = _banded_reflect_matrix(H, weights_np)        # left-multiplies rows
    bh_np = _banded_reflect_matrix(W, weights_np).T      # right-multiplies cols
    bv_f32, bh_f32 = jnp.asarray(bv_np), jnp.asarray(bh_np)
    bv_bf16 = jnp.asarray(bv_np, dtype=jnp.bfloat16)     # MXU inputs (bf16 native)
    bh_bf16 = jnp.asarray(bh_np, dtype=jnp.bfloat16)

    # set_image_init: permute(2,0,1).unsqueeze(0) then blur (one-time setup, f32 JAX)
    im_init = jnp.transpose(im_init_hwc, (2, 0, 1))[None]            # (1, C, H, W)
    init_blurred = gaussian_blur_banded_jax(im_init, bv_f32, bh_f32)  # (1, C, H, W)

    loss = tone_fill_loss(cur_raster, init_blurred, bv_bf16, bh_bf16,
                          dist_loss_weight, step=310)
    jax.block_until_ready(loss)

    # Sanity check against the plain-JAX f32 reference.  Tolerance widened
    # DELIBERATELY: the kernel feeds bf16 inputs to the MXU (f32 accumulation),
    # while the reference is a pure-f32 shifted-tap blur.
    ref = _reference_loss(cur_raster, init_blurred, weights, dist_loss_weight, step=310)
    np.testing.assert_allclose(np.asarray(loss), np.asarray(ref), rtol=5e-2, atol=5e-4)

    print("KERNEL_OK")
</pallas_src>

<mosaic_0001>
module attributes {stable_mosaic.version = 11 : i64} {
  func.func @kernel(%arg0: i32, %arg1: memref<1x3x16x16xf32, #tpu.memory_space<vmem>>, %arg2: memref<1x3x16x16xf32, #tpu.memory_space<vmem>>, %arg3: memref<16x16xbf16, #tpu.memory_space<vmem>>, %arg4: memref<16x16xbf16, #tpu.memory_space<vmem>>, %arg5: memref<1x1x16xf32, #tpu.memory_space<vmem>>) attributes {dimension_semantics = [#tpu.dimension_semantics<parallel>], iteration_bounds = array<i64: 2>, scalar_prefetch = 0 : i64, scratch_operands = 0 : i64, tpu.core_type = #tpu.core_type<tc>, window_params = [{transform_indices = @transform_0, window_bounds = array<i64: 1, 3, 16, 16>}, {pipeline_mode = #tpu.pipeline_mode<synchronous>, transform_indices = @transform_1, window_bounds = array<i64: 1, 3, 16, 16>}, {pipeline_mode = #tpu.pipeline_mode<synchronous>, transform_indices = @transform_2, window_bounds = array<i64: 16, 16>}, {pipeline_mode = #tpu.pipeline_mode<synchronous>, transform_indices = @transform_3, window_bounds = array<i64: 16, 16>}, {transform_indices = @transform_4, window_bounds = array<i64: 1, 1, 16>}]} {
    %c0 = arith.constant 0 : index
    %c0_0 = arith.constant 0 : index
    %c0_1 = arith.constant 0 : index
    %c0_2 = arith.constant 0 : index
    %0 = vector.load %arg1[%c0, %c0_0, %c0_1, %c0_2] : memref<1x3x16x16xf32, #tpu.memory_space<vmem>>, vector<1x3x16x16xf32>
    %1 = vector.shape_cast %0 : vector<1x3x16x16xf32> to vector<3x16x16xf32>
    %c0_3 = arith.constant 0 : index
    %c0_4 = arith.constant 0 : index
    %c0_5 = arith.constant 0 : index
    %c0_6 = arith.constant 0 : index
    %2 = vector.load %arg2[%c0_3, %c0_4, %c0_5, %c0_6] : memref<1x3x16x16xf32, #tpu.memory_space<vmem>>, vector<1x3x16x16xf32>
    %3 = vector.shape_cast %2 : vector<1x3x16x16xf32> to vector<3x16x16xf32>
    %c0_7 = arith.constant 0 : index
    %c0_8 = arith.constant 0 : index
    %4 = vector.load %arg3[%c0_7, %c0_8] : memref<16x16xbf16, #tpu.memory_space<vmem>>, vector<16x16xbf16>
    %c0_9 = arith.constant 0 : index
    %c0_10 = arith.constant 0 : index
    %5 = vector.load %arg4[%c0_9, %c0_10] : memref<16x16xbf16, #tpu.memory_space<vmem>>, vector<16x16xbf16>
    %6 = vector.shape_cast %1 : vector<3x16x16xf32> to vector<48x16xf32>
    %7 = arith.truncf %6 : vector<48x16xf32> to vector<48x16xbf16>
    %cst = arith.constant dense<0.000000e+00> : vector<48x16xf32>
    %8 = tpu.matmul %7, %5, %cst {dimension_numbers = #tpu.dot_dimension_numbers<[1], [0], [0], [1], [0, 0, 1, 1], [], []>} : vector<48x16xbf16>, vector<16x16xbf16>, vector<48x16xf32> -> vector<48x16xf32>
    %9 = vector.shape_cast %8 : vector<48x16xf32> to vector<3x16x16xf32>
    %10 = arith.truncf %9 : vector<3x16x16xf32> to vector<3x16x16xbf16>
    %cst_11 = arith.constant 0.000000e+00 : f32
    %11 = vector.broadcast %cst_11 : f32 to vector<16x16xf32>
    %12 = vector.extract_strided_slice %10 {offsets = [0, 0, 0], sizes = [1, 16, 16], strides = [1, 1, 1]} : vector<3x16x16xbf16> to vector<1x16x16xbf16>
    %13 = vector.shape_cast %12 : vector<1x16x16xbf16> to vector<16x16xbf16>
    %cst_12 = arith.constant dense<0.000000e+00> : vector<16x16xf32>
    %14 = tpu.matmul %4, %13, %cst_12 {dimension_numbers = #tpu.dot_dimension_numbers<[1], [0], [0], [1], [0, 0, 1, 1], [], []>} : vector<16x16xbf16>, vector<16x16xbf16>, vector<16x16xf32> -> vector<16x16xf32>
    %15 = vector.extract_strided_slice %3 {offsets = [0, 0, 0], sizes = [1, 16, 16], strides = [1, 1, 1]} : vector<3x16x16xf32> to vector<1x16x16xf32>
    %16 = vector.shape_cast %15 : vector<1x16x16xf32> to vector<16x16xf32>
    %17 = arith.subf %14, %16 : vector<16x16xf32>
    %18 = arith.mulf %17, %17 : vector<16x16xf32>
    %19 = arith.addf %11, %18 : vector<16x16xf32>
    %20 = vector.extract_strided_slice %10 {offsets = [1, 0, 0], sizes = [1, 16, 16], strides = [1, 1, 1]} : vector<3x16x16xbf16> to vector<1x16x16xbf16>
    %21 = vector.shape_cast %20 : vector<1x16x16xbf16> to vector<16x16xbf16>
    %cst_13 = arith.constant dense<0.000000e+00> : vector<16x16xf32>
    %22 = tpu.matmul %4, %21, %cst_13 {dimension_numbers = #tpu.dot_dimension_numbers<[1], [0], [0], [1], [0, 0, 1, 1], [], []>} : vector<16x16xbf16>, vector<16x16xbf16>, vector<16x16xf32> -> vector<16x16xf32>
    %23 = vector.extract_strided_slice %3 {offsets = [1, 0, 0], sizes = [1, 16, 16], strides = [1, 1, 1]} : vector<3x16x16xf32> to vector<1x16x16xf32>
    %24 = vector.shape_cast %23 : vector<1x16x16xf32> to vector<16x16xf32>
    %25 = arith.subf %22, %24 : vector<16x16xf32>
    %26 = arith.mulf %25, %25 : vector<16x16xf32>
    %27 = arith.addf %19, %26 : vector<16x16xf32>
    %28 = vector.extract_strided_slice %10 {offsets = [2, 0, 0], sizes = [1, 16, 16], strides = [1, 1, 1]} : vector<3x16x16xbf16> to vector<1x16x16xbf16>
    %29 = vector.shape_cast %28 : vector<1x16x16xbf16> to vector<16x16xbf16>
    %cst_14 = arith.constant dense<0.000000e+00> : vector<16x16xf32>
    %30 = tpu.matmul %4, %29, %cst_14 {dimension_numbers = #tpu.dot_dimension_numbers<[1], [0], [0], [1], [0, 0, 1, 1], [], []>} : vector<16x16xbf16>, vector<16x16xbf16>, vector<16x16xf32> -> vector<16x16xf32>
    %31 = vector.extract_strided_slice %3 {offsets = [2, 0, 0], sizes = [1, 16, 16], strides = [1, 1, 1]} : vector<3x16x16xf32> to vector<1x16x16xf32>
    %32 = vector.shape_cast %31 : vector<1x16x16xf32> to vector<16x16xf32>
    %33 = arith.subf %30, %32 : vector<16x16xf32>
    %34 = arith.mulf %33, %33 : vector<16x16xf32>
    %35 = arith.addf %27, %34 : vector<16x16xf32>
    %cst_15 = arith.constant dense<0.000000e+00> : vector<16xf32>
    %36 = vector.multi_reduction <add>, %35, %cst_15 [0] : vector<16x16xf32> to vector<16xf32>
    %37 = vector.shape_cast %36 : vector<16xf32> to vector<1x16xf32>
    %38 = vector.shape_cast %37 : vector<1x16xf32> to vector<1x1x16xf32>
    %c0_16 = arith.constant 0 : index
    %c0_17 = arith.constant 0 : index
    %c0_18 = arith.constant 0 : index
    %39 = vector.load %arg5[%c0_16, %c0_17, %c0_18] : memref<1x1x16xf32, #tpu.memory_space<vmem>>, vector<1x1x16xf32>
    tpu.vector_store %arg5[%c0_16, %c0_17, %c0_18], %38 {strides = array<i32>} : memref<1x1x16xf32, #tpu.memory_space<vmem>>, vector<1x1x16xf32>,
    return
  }
  func.func @transform_0(%arg0: i32) -> (i32, i32, i32, i32) {
    %c0_i32 = arith.constant 0 : i32
    %c0_i32_0 = arith.constant 0 : i32
    %c0_i32_1 = arith.constant 0 : i32
    %c0_i32_2 = arith.constant 0 : i32
    return %arg0, %c0_i32, %c0_i32_0, %c0_i32_1 : i32, i32, i32, i32
  }
  func.func @transform_1(%arg0: i32) -> (i32, i32, i32, i32) {
    %c0_i32 = arith.constant 0 : i32
    %c0_i32_0 = arith.constant 0 : i32
    %c0_i32_1 = arith.constant 0 : i32
    %c0_i32_2 = arith.constant 0 : i32
    %c0_i32_3 = arith.constant 0 : i32
    return %c0_i32, %c0_i32_0, %c0_i32_1, %c0_i32_2 : i32, i32, i32, i32
  }
  func.func @transform_2(%arg0: i32) -> (i32, i32) {
    %c0_i32 = arith.constant 0 : i32
    %c0_i32_0 = arith.constant 0 : i32
    %c0_i32_1 = arith.constant 0 : i32
    return %c0_i32, %c0_i32_0 : i32, i32
  }
  func.func @transform_3(%arg0: i32) -> (i32, i32) {
    %c0_i32 = arith.constant 0 : i32
    %c0_i32_0 = arith.constant 0 : i32
    %c0_i32_1 = arith.constant 0 : i32
    return %c0_i32, %c0_i32_0 : i32, i32
  }
  func.func @transform_4(%arg0: i32) -> (i32, i32, i32) {
    %c0_i32 = arith.constant 0 : i32
    %c0_i32_0 = arith.constant 0 : i32
    %c0_i32_1 = arith.constant 0 : i32
    return %arg0, %c0_i32, %c0_i32_0 : i32, i32, i32
  }
}

module attributes {stable_mosaic.version = 11 : i64} {
  func.func @kernel(%arg0: i32, %arg1: memref<1x3x16x16xf32, #tpu.memory_space<vmem>>, %arg2: memref<1x3x16x16xf32, #tpu.memory_space<vmem>>, %arg3: memref<16x16xbf16, #tpu.memory_space<vmem>>, %arg4: memref<16x16xbf16, #tpu.memory_space<vmem>>, %arg5: memref<1x1x16xf32, #tpu.memory_space<vmem>>) attributes {dimension_semantics = [#tpu.dimension_semantics<parallel>], iteration_bounds = array<i64: 2>, scalar_prefetch = 0 : i64, scratch_operands = 0 : i64, tpu.core_type = #tpu.core_type<tc>, window_params = [{transform_indices = @transform_0, window_bounds = array<i64: 1, 3, 16, 16>}, {pipeline_mode = #tpu.pipeline_mode<synchronous>, transform_indices = @transform_1, window_bounds = array<i64: 1, 3, 16, 16>}, {pipeline_mode = #tpu.pipeline_mode<synchronous>, transform_indices = @transform_2, window_bounds = array<i64: 16, 16>}, {pipeline_mode = #tpu.pipeline_mode<synchronous>, transform_indices = @transform_3, window_bounds = array<i64: 16, 16>}, {transform_indices = @transform_4, window_bounds = array<i64: 1, 1, 16>}]} {
    %c0 = arith.constant 0 : index
    %c0_0 = arith.constant 0 : index
    %c0_1 = arith.constant 0 : index
    %c0_2 = arith.constant 0 : index
    %0 = vector.load %arg1[%c0, %c0_0, %c0_1, %c0_2] : memref<1x3x16x16xf32, #tpu.memory_space<vmem>>, vector<1x3x16x16xf32>
    %1 = vector.shape_cast %0 : vector<1x3x16x16xf32> to vector<3x16x16xf32>
    %c0_3 = arith.constant 0 : index
    %c0_4 = arith.constant 0 : index
    %c0_5 = arith.constant 0 : index
    %c0_6 = arith.constant 0 : index
    %2 = vector.load %arg2[%c0_3, %c0_4, %c0_5, %c0_6] : memref<1x3x16x16xf32, #tpu.memory_space<vmem>>, vector<1x3x16x16xf32>
    %3 = vector.shape_cast %2 : vector<1x3x16x16xf32> to vector<3x16x16xf32>
    %c0_7 = arith.constant 0 : index
    %c0_8 = arith.constant 0 : index
    %4 = vector.load %arg3[%c0_7, %c0_8] : memref<16x16xbf16, #tpu.memory_space<vmem>>, vector<16x16xbf16>
    %c0_9 = arith.constant 0 : index
    %c0_10 = arith.constant 0 : index
    %5 = vector.load %arg4[%c0_9, %c0_10] : memref<16x16xbf16, #tpu.memory_space<vmem>>, vector<16x16xbf16>
    %6 = vector.shape_cast %1 : vector<3x16x16xf32> to vector<48x16xf32>
    %7 = arith.truncf %6 : vector<48x16xf32> to vector<48x16xbf16>
    %cst = arith.constant dense<0.000000e+00> : vector<48x16xf32>
    %8 = tpu.matmul %7, %5, %cst {dimension_numbers = #tpu.dot_dimension_numbers<[1], [0], [0], [1], [0, 0, 1, 1], [], []>} : vector<48x16xbf16>, vector<16x16xbf16>, vector<48x16xf32> -> vector<48x16xf32>
    %9 = vector.shape_cast %8 : vector<48x16xf32> to vector<3x16x16xf32>
    %10 = arith.truncf %9 : vector<3x16x16xf32> to vector<3x16x16xbf16>
    %cst_11 = arith.constant 0.000000e+00 : f32
    %11 = vector.broadcast %cst_11 : f32 to vector<16x16xf32>
    %12 = vector.extract_strided_slice %10 {offsets = [0, 0, 0], sizes = [1, 16, 16], strides = [1, 1, 1]} : vector<3x16x16xbf16> to vector<1x16x16xbf16>
    %13 = vector.shape_cast %12 : vector<1x16x16xbf16> to vector<16x16xbf16>
    %cst_12 = arith.constant dense<0.000000e+00> : vector<16x16xf32>
    %14 = tpu.matmul %4, %13, %cst_12 {dimension_numbers = #tpu.dot_dimension_numbers<[1], [0], [0], [1], [0, 0, 1, 1], [], []>} : vector<16x16xbf16>, vector<16x16xbf16>, vector<16x16xf32> -> vector<16x16xf32>
    %15 = vector.extract_strided_slice %3 {offsets = [0, 0, 0], sizes = [1, 16, 16], strides = [1, 1, 1]} : vector<3x16x16xf32> to vector<1x16x16xf32>
    %16 = vector.shape_cast %15 : vector<1x16x16xf32> to vector<16x16xf32>
    %17 = arith.subf %14, %16 : vector<16x16xf32>
    %18 = arith.mulf %17, %17 : vector<16x16xf32>
    %19 = arith.addf %11, %18 : vector<16x16xf32>
    %20 = vector.extract_strided_slice %10 {offsets = [1, 0, 0], sizes = [1, 16, 16], strides = [1, 1, 1]} : vector<3x16x16xbf16> to vector<1x16x16xbf16>
    %21 = vector.shape_cast %20 : vector<1x16x16xbf16> to vector<16x16xbf16>
    %cst_13 = arith.constant dense<0.000000e+00> : vector<16x16xf32>
    %22 = tpu.matmul %4, %21, %cst_13 {dimension_numbers = #tpu.dot_dimension_numbers<[1], [0], [0], [1], [0, 0, 1, 1], [], []>} : vector<16x16xbf16>, vector<16x16xbf16>, vector<16x16xf32> -> vector<16x16xf32>
    %23 = vector.extract_strided_slice %3 {offsets = [1, 0, 0], sizes = [1, 16, 16], strides = [1, 1, 1]} : vector<3x16x16xf32> to vector<1x16x16xf32>
    %24 = vector.shape_cast %23 : vector<1x16x16xf32> to vector<16x16xf32>
    %25 = arith.subf %22, %24 : vector<16x16xf32>
    %26 = arith.mulf %25, %25 : vector<16x16xf32>
    %27 = arith.addf %19, %26 : vector<16x16xf32>
    %28 = vector.extract_strided_slice %10 {offsets = [2, 0, 0], sizes = [1, 16, 16], strides = [1, 1, 1]} : vector<3x16x16xbf16> to vector<1x16x16xbf16>
    %29 = vector.shape_cast %28 : vector<1x16x16xbf16> to vector<16x16xbf16>
    %cst_14 = arith.constant dense<0.000000e+00> : vector<16x16xf32>
    %30 = tpu.matmul %4, %29, %cst_14 {dimension_numbers = #tpu.dot_dimension_numbers<[1], [0], [0], [1], [0, 0, 1, 1], [], []>} : vector<16x16xbf16>, vector<16x16xbf16>, vector<16x16xf32> -> vector<16x16xf32>
    %31 = vector.extract_strided_slice %3 {offsets = [2, 0, 0], sizes = [1, 16, 16], strides = [1, 1, 1]} : vector<3x16x16xf32> to vector<1x16x16xf32>
    %32 = vector.shape_cast %31 : vector<1x16x16xf32> to vector<16x16xf32>
    %33 = arith.subf %30, %32 : vector<16x16xf32>
    %34 = arith.mulf %33, %33 : vector<16x16xf32>
    %35 = arith.addf %27, %34 : vector<16x16xf32>
    %cst_15 = arith.constant dense<0.000000e+00> : vector<16xf32>
    %36 = vector.multi_reduction <add>, %35, %cst_15 [0] : vector<16x16xf32> to vector<16xf32>
    %37 = vector.shape_cast %36 : vector<16xf32> to vector<1x16xf32>
    %38 = vector.shape_cast %37 : vector<1x16xf32> to vector<1x1x16xf32>
    %c0_16 = arith.constant 0 : index
    %c0_17 = arith.constant 0 : index
    %c0_18 = arith.constant 0 : index
    %39 = vector.load %arg5[%c0_16, %c0_17, %c0_18] : memref<1x1x16xf32, #tpu.memory_space<vmem>>, vector<1x1x16xf32>
    tpu.vector_store %arg5[%c0_16, %c0_17, %c0_18], %38 {strides = array<i32>} : memref<1x1x16xf32, #tpu.memory_space<vmem>>, vector<1x1x16xf32>,
    return
  }
  func.func @transform_0(%arg0: i32) -> (i32, i32, i32, i32) {
    %c0_i32 = arith.constant 0 : i32
    %c0_i32_0 = arith.constant 0 : i32
    %c0_i32_1 = arith.constant 0 : i32
    %c0_i32_2 = arith.constant 0 : i32
    return %arg0, %c0_i32, %c0_i32_0, %c0_i32_1 : i32, i32, i32, i32
  }
  func.func @transform_1(%arg0: i32) -> (i32, i32, i32, i32) {
    %c0_i32 = arith.constant 0 : i32
    %c0_i32_0 = arith.constant 0 : i32
    %c0_i32_1 = arith.constant 0 : i32
    %c0_i32_2 = arith.constant 0 : i32
    %c0_i32_3 = arith.constant 0 : i32
    return %c0_i32, %c0_i32_0, %c0_i32_1, %c0_i32_2 : i32, i32, i32, i32
  }
  func.func @transform_2(%arg0: i32) -> (i32, i32) {
    %c0_i32 = arith.constant 0 : i32
    %c0_i32_0 = arith.constant 0 : i32
    %c0_i32_1 = arith.constant 0 : i32
    return %c0_i32, %c0_i32_0 : i32, i32
  }
  func.func @transform_3(%arg0: i32) -> (i32, i32) {
    %c0_i32 = arith.constant 0 : i32
    %c0_i32_0 = arith.constant 0 : i32
    %c0_i32_1 = arith.constant 0 : i32
    return %c0_i32, %c0_i32_0 : i32, i32
  }
  func.func @transform_4(%arg0: i32) -> (i32, i32, i32) {
    %c0_i32 = arith.constant 0 : i32
    %c0_i32_0 = arith.constant 0 : i32
    %c0_i32_1 = arith.constant 0 : i32
    return %arg0, %c0_i32, %c0_i32_0 : i32, i32, i32
  }
}

</mosaic_0001>

<bundles_post_ra>
// kernel: tpu_custom_call.1
= control target key start
LH: loop header
LB: loop body
LE: loop exit
PB: predicated region body
PF: predicated region fallthrough
CT: control target
= control target key end

     0   :  { %9 = vsyncpa [#allocation3], 0  ;;  %s1187_s0 = inlined_call_operand.hbm [shape: f32[2,3,16,16], index: 0, kind: input, shape index: {}]   ;;  %s1188_s1 = inlined_call_operand.hbm [shape: f32[1,3,16,16], index: 1, kind: input, shape index: {}]   ;;  %s1189_s2 = inlined_call_operand.hbm [shape: bf16[16,16], index: 2, kind: input, shape index: {}]   ;;  %s1190_s3 = inlined_call_operand.vmem [shape: bf16[16,16], index: 3, kind: input, shape index: {}]   ;;  %s1191_s4 = inlined_call_operand.hbm [shape: f32[2,1,16], index: 4, kind: output, shape index: {}]  }
   0x1   :  { %11 = vsyncpa [#allocation3 + $0x1], 0 }
   0x2   :  { %12 = vsyncpa [#allocation6], 0 }
   0x3   :  { %13 = vsyncpa [#allocation4], 0 }
   0x4   :  { %15 = vsyncpa [#allocation4 + $0x1], 0  ;;  %s931_s15 = smov 0   ;;  %s933_s16 = smov 0  }
   0x5   :  { %s935_s17 = smov 0   ;;  %s937_s18 = smov 0  }
   0x6 LB: > { %s952_s19 = sadd.s32 4294967295, %s894_s18   ;;  %s598_s20 = sadd.s32 4294967294, %s894_s18   ;;  %s894_s18 = sphi %s937_s18, %s1211_s18   ;;  %s890_s17 = sphi %s935_s17, %s1210_s17   ;;  %s886_s16 = sphi %s933_s16, %s1209_s16   ;;  %s882_s15 = sphi %s931_s15, %s1208_s15  }
   0x7   : > { %p41_p0 = scmp.ne.s32.totalorder %s886_s16, %s882_s15  ;;  %p1192_p1 = scmp.eq.s32.totalorder %s952_s19, 0 }
   0x8   : > { %p134_p3 = scmp.eq.s32.totalorder %s598_s20, 1  ;;  %p599_p5 = scmp.ge.s32.totalorder %s894_s18, 1 }
   0x9   : > { %p961_p4 = por %p1192_p1, %p41_p0  ;;  %p141_p7 = scmp.lt.s32.totalorder %s894_s18, 3 }
   0xa   : > { %p966_p6 = por %p134_p3, %p41_p0  ;;  %s896_s24 = smov [#allocation5]  }
   0xb   : > { %s1195_s21 = scalar_select %p961_p4, 1, 0 }
   0xc   : > { %s1196_s22 = scalar_select %p966_p6, 1, 0 }
   0xd   : > { %p971_p8 = pnand %p599_p5, %p141_p7  ;;  %s153_s25 = sshll.u32 %s896_s24, 4  ;;  %s975_s25 = int_to_ptr.vmem [resolvable:$true] %s153_s25 }
   0xe   : > { %s897_s27 = smov [#allocation7]   ;;  %s738_s5 = scalar_lea.hbm %s1188_s1, 768 }
   0xf   : > { %p675_p9 = pneg %p971_p8  ;;  %s166_s28 = sshll.u32 %s897_s27, 4  ;;  %s986_s28 = int_to_ptr.vmem [resolvable:$true] %s166_s28 }
  0x10   : > { %p739_p12 = scmp.ne.s32.totalorder %s1188_s1, %s738_s5  ;;  %p745_p5 = scmp.lt.u32.totalorder %s738_s5, %s1188_s1 }
  0x11   : > { %p982_p11 = pnand %p675_p9, %p1192_p1 }
  0x13   : > { %p740_p13 = pneg %p982_p11 }
  0x15   : > { %p741_p0 = pnand %p740_p13, %p739_p12 }
  0x17   : > { %p742_p3 = pneg %p741_p0 }
  0x19   : > { %p747_p7 = pnand %p745_p5, %p742_p3 }
  0x1b   : > { %750 = shalt.err (!%p747_p7)
}
  0x1c   : > { %s751_s10 = scalar_lea.vmem %s975_s25, 768  ;;  %p759_p2 = scmp.lt.s32.totalorder %s975_s25, %s975_s25 }
  0x1d   : > { %p752_p9 = scmp.ne.s32.totalorder %s975_s25, %s751_s10  ;;  %p760_p12 = scmp.lt.s32.totalorder %s751_s10, %s751_s10 }
  0x1f   : > { %p754_p10 = pnand %p752_p9, %p740_p13  ;;  %p761_p0 = por %p760_p12, %p759_p2 }
  0x21   : > { %p755_p1 = pneg %p754_p10 }
  0x23   : > { %p762_p6 = pnand %p761_p0, %p755_p1 }
  0x25   : > { %765 = shalt.err (!%p762_p6)
}
  0x26   : > { %s898_s11 = smov 128   ;;  %s899_s12 = smov 8  }
  0x27   : > { %678 = dma.hbm_to_vmem [thread:$0]  (!%p982_p11), %s1188_s1, 768, %s975_s25, [#allocation6], %s898_s11, %s898_s11, %s899_s12  }
  0x28   : > { %s766_s27 = scalar_lea.hbm %s1189_s2, 128 }
  0x29   : > { %p767_p1 = scmp.ne.s32.totalorder %s1189_s2, %s766_s27  ;;  %p773_p10 = scmp.lt.u32.totalorder %s766_s27, %s1189_s2 }
  0x2b   : > { %p769_p2 = pnand %p767_p1, %p740_p13 }
  0x2d   : > { %p770_p6 = pneg %p769_p2 }
  0x2f   : > { %p775_p3 = pnand %p773_p10, %p770_p6 }
  0x31   : > { %778 = shalt.err (!%p775_p3)
}
  0x32   : > { %s779_s25 = scalar_lea.vmem %s986_s28, 128  ;;  %p787_p12 = scmp.lt.s32.totalorder %s986_s28, %s986_s28 }
  0x33   : > { %p780_p5 = scmp.ne.s32.totalorder %s986_s28, %s779_s25  ;;  %p788_p0 = scmp.lt.s32.totalorder %s779_s25, %s779_s25 }
  0x35   : > { %p782_p7 = pnand %p780_p5, %p740_p13  ;;  %p789_p1 = por %p788_p0, %p787_p12 }
  0x37   : > { %p783_p9 = pneg %p782_p7 }
  0x39   : > { %p790_p2 = pnand %p789_p1, %p783_p9 }
  0x3b   : > { %793 = shalt.err (!%p790_p2)
}
  0x3c   : > { %s900_s7 = smov 64   ;;  %s901_s8 = smov 4  }
  0x3d   : > { %681 = dma.hbm_to_vmem [thread:$0]  (!%p982_p11), %s1189_s2, 128, %s986_s28, [#allocation6], %s900_s7, %s900_s7, %s901_s8  }
  0x3e   : > { %s1044_s13 = sadd.s32 1, %s894_s18   ;;  %s28_s20 = sadd.s32 1, %s890_s17 }
  0x3f   : > { %s25_s14 = ssub.s32 %s894_s18, %s1044_s13  ;;  %p35_p6 = scmp.ne.s32.totalorder %s890_s17, %s886_s16 }
  0x40   : > { %p26_p13 = scmp.eq.s32.totalorder %s25_s14, 0  ;;  %p36_p10 = scmp.eq.s32.totalorder %s894_s18, 0 }
  0x41   : > { %p1199_p5 = scmp.eq.s32.totalorder %s952_s19, 1  ;;  %p692_p9 = scmp.lt.s32.totalorder %s894_s18, 2 }
  0x42   : > { %s1053_s24 = scalar_select %p26_p13, %s890_s17, %s28_s20  }
  0x43   : > { %p37_p3 = por %p36_p10, %p35_p6  ;;  %p1057_p7 = por %p1199_p5, %p35_p6 }
  0x44   : > { %s183_s26 = sand.u32 1, %s890_s17   ;;  %s661_s28 = smul.u32 768, %s894_s18 }
  0x45   : > { %s1200_s27 = scalar_select %p1057_p7, 1, 0 }
  0x46   : > { %s660_s29 = smul.u32 48, %s183_s26  ;;  %p1064_p11 = pnand %p692_p9, %p37_p3 }
  0x47   : > { %s1071_s25 = scalar_lea.hbm %s1187_s0, %s661_s28  ;;  %s1075_s9 = scalar_lea.sflag [#allocation3], %s183_s26 }
  0x48   : > { %s187_s7 = scalar_lea.vmem [#allocation2], %s660_s29  ;;  %s794_s10 = scalar_lea.hbm %s1071_s25, 768 }
  0x49   : > { %s194_s8 = sshll.u32 %s187_s7, 4  ;;  %p795_p12 = scmp.ne.s32.totalorder %s1071_s25, %s794_s10  ;;  %s1073_s8 = int_to_ptr.vmem [resolvable:$true] %s194_s8 }
  0x4a   : > { %p796_p0 = pneg %p1064_p11  ;;  %s799_s28 = scalar_lea.hbm %s1187_s0, 1536 }
  0x4b   : > { %p800_p13 = scmp.lt.u32.totalorder %s1071_s25, %s1187_s0  ;;  %p801_p6 = scmp.lt.u32.totalorder %s799_s28, %s794_s10 }
  0x4c   : > { %p797_p1 = pnand %p796_p0, %p795_p12  ;;  %p803_p3 = scmp.lt.u32.totalorder %s794_s10, %s1071_s25 }
  0x4d   : > { %p802_p10 = por %p801_p6, %p800_p13 }
  0x4e   : > { %p798_p2 = pneg %p797_p1 }
  0x4f   : > { %p804_p5 = por %p803_p3, %p802_p10 }
  0x51   : > { %p805_p9 = pnand %p804_p5, %p798_p2 }
  0x53   : > { %808 = shalt.err (!%p805_p9)
}
  0x54   : > { %s809_s26 = scalar_lea.vmem %s1073_s8, 768  ;;  %s902_s29 = smov [#allocation2]  }
  0x55   : > { %p810_p12 = scmp.ne.s32.totalorder %s1073_s8, %s809_s26  ;;  %s814_s7 = sshll.u32 %s902_s29, 4  ;;  %s815_s7 = int_to_ptr.vmem [resolvable:$false] %s814_s7 }
  0x56   : > { %s816_s14 = scalar_lea.vmem %s815_s7, 1536  ;;  %p817_p4 = scmp.lt.s32.totalorder %s1073_s8, %s815_s7 }
  0x57   : > { %p812_p1 = pnand %p810_p12, %p796_p0  ;;  %p818_p13 = scmp.lt.s32.totalorder %s816_s14, %s809_s26 }
  0x59   : > { %p813_p7 = pneg %p812_p1  ;;  %p819_p6 = por %p818_p13, %p817_p4 }
  0x5b   : > { %p820_p10 = pnand %p819_p6, %p813_p7 }
  0x5d   : > { %823 = shalt.err (!%p820_p10)
}
  0x5e   : > { %685 = dma.hbm_to_vmem [thread:$0]  (!%p1064_p11), %s1071_s25, 768, %s1073_s8, %s1075_s9, %s898_s11, %s898_s11, %s899_s12  }
  0x5f   : > { %206 = sbr.rel (%p971_p8) target bundleno = 596 (0x254), region = 36  ;;  %s1109_s10 = sand.u32 (!%p971_p8), 1, %s886_s16  }
  0x60   : > { %s662_s20 = smul.u32 (!%p971_p8), 48, %s1109_s10  ;;  %s209_s28 = scalar_lea.sflag (!%p971_p8), [#allocation3], %s1109_s10 }
  0x61   : > { %p1202_p4 = scmp.ne.s32.totalorder (!%p971_p8), %s1195_s21, 0 }
  0x62   : > { %s212_s5 = scalar_lea.vmem (!%p971_p8), [#allocation2], %s662_s20 }
  0x66   : > { %869 = dma.done.wait (%p1202_p4), %s209_s28, 768  }
  0x67   : > { %871 = vsyncadd (%p1202_p4), %s209_s28, 4294966528  ;;  %p1203_p7 = scmp.eq.s32.totalorder %s952_s19, 0 }
  0x69   : > { %873 = dma.done.wait (%p1203_p7), [#allocation6], 896   ;;  %p1204_p11 = pmov %p1203_p7 }
  0x6a   : > { %v903_v0 = vmov 0.0   ;;  %vm904_vm0 = vmmov 0   ;;  %v736_v1 = vld [vmem:[%s1190_s3] sm:$0xff]   ;;  %v246_v3 = vld [vmem:[%s212_s5 + $0x8] sm:$0xff]  ;;  %vm270_vm1 = vcmask 130048   ;;  %v248_v6 = vld [vmem:[%s212_s5 + $0x18] sm:$0xff] }
  0x6b   : > { %875 = vsyncadd (%p1204_p11), [#allocation6], 4294966400  ;;  %628 = vmatprep.subr.bf16.mxu0 %v903_v0  ;;  %630 = vmatprep.mubr.msk.bf16.mxu0 %vm904_vm0, %v903_v0  ;;  %v245_v2 = vld [vmem:[%s212_s5] sm:$0xff]  ;;  %v247_v5 = vld [vmem:[%s212_s5 + $0x10] sm:$0xff]  ;;  %s615_s21 = sshll.u32 %s952_s19, 4  ;;  %s243_s12 = scalar_lea.vmem [#allocation8], %s1109_s10 }
  0x6c   : > { %642 = vmatprep.subr.bf16.mxu1 %v903_v0  ;;  %644 = vmatprep.mubr.msk.bf16.mxu1 %vm904_vm0, %v903_v0  ;;  %v261_v4 = vpack.c.bf16 %v246_v3, %v245_v2  ;;  %v262_v7 = vpack.c.bf16 %v248_v6, %v247_v5  ;;  %v249_v8 = vld [vmem:[%s212_s5 + $0x20] sm:$0xff]  ;;  %v250_v9 = vld [vmem:[%s212_s5 + $0x28] sm:$0xff]  ;;  %s513_s30 = sshll.u32 %s243_s12, 4  ;;  %vm498_vm2 = vcmask 122880   ;;  %s1143_s9 = scalar_lea.hbm %s1191_s4, %s615_s21  ;;  %s1145_s30 = int_to_ptr.vmem [resolvable:$true] %s513_s30 }
  0x6d   : > { %629 = vmatpush3.bf16.msra.mxu0 %v736_v1  ;;  %v263_v10 = vpack.c.bf16 %v250_v9, %v249_v8  ;;  %v737_v16 = vld [vmem:[#allocation7] sm:$0xff]   ;;  %v251_v31 = vld [vmem:[#allocation5] sm:$0xff]  ;;  %v252_v32 = vld [vmem:[#allocation5 + $0x8] sm:$0xff]  ;;  %s501_s6 = scalar_lea.sflag [#allocation4], %s1109_s10  ;;  %s824_s26 = scalar_lea.vmem %s1145_s30, 16 }
  0x6e   : > { %v253_v33 = vld [vmem:[#allocation5 + $0x10] sm:$0xff]  ;;  %v254_v36 = vld [vmem:[#allocation5 + $0x18] sm:$0xff]  ;;  %v255_v48 = vld [vmem:[#allocation5 + $0x20] sm:$0xff]  ;;  %p825_p8 = scmp.ne.s32.totalorder %s1145_s30, %s824_s26  ;;  %p1205_p0 = scmp.ne.s32.totalorder %s1200_s27, 0 }
  0x6f   : > { %v256_v51 = vld [vmem:[#allocation5 + $0x28] sm:$0xff]  ;;  %s905_s19 = smov [#allocation8]  }
  0x70   : > { %631 = vmatmul.mubr.msk.bf16.vlgmr.msra.gmra.mrb[0].mxu0 %vm270_vm1, %v261_v4  ;;  %p826_p2 = pnand %p825_p8, %p1205_p0  ;;  %s828_s29 = sshll.u32 %s905_s19, 4  ;;  %s829_s29 = int_to_ptr.vmem [resolvable:$false] %s828_s29 }
  0x71   : > { %634 = vmatprep.mubr.msk.bf16.mxu0 %vm904_vm0, %v903_v0  ;;  %s830_s7 = scalar_lea.vmem %s829_s29, 32  ;;  %p831_p5 = scmp.lt.s32.totalorder %s1145_s30, %s829_s29 }
  0x72   : > { %p827_p3 = pneg %p826_p2  ;;  %p832_p9 = scmp.lt.s32.totalorder %s830_s7, %s824_s26 }
  0x74   : > { %p833_p12 = por %p832_p9, %p831_p5 }
  0x76   : > { %p834_p1 = pnand %p833_p12, %p827_p3 }
  0x78   : > { %635 = vmatmul.mubr.msk.bf16.gmra.mrb[4].mxu0 %vm270_vm1, %v262_v7 }
  0x79   : > { %638 = vmatprep.mubr.msk.bf16.mxu0 %vm904_vm0, %v903_v0 }
  0x80   : > { %639 = vmatmul.mubr.msk.bf16.gmra.mrb[8].mxu0 %vm270_vm1, %v263_v10 }
 0x143   : > { %v314_v11 = vpop.f32.mrb[0].mxu0 }
 0x144   : > { %v632_v12 = vpop.f32.mrb[1].mxu0 }
 0x145   : > { %v317_v13 = vpop.f32.mrb[2].mxu0 }
 0x146   : > { %v337_v14 = vpack.c.bf16 %v317_v13, %v314_v11  ;;  %v633_v15 = vpop.f32.mrb[3].mxu0 }
 0x148   : > { %643 = vmatpush3.bf16.msra.mxu1 %v337_v14 }
 0x149   : > { %648 = vmatprep.subr.bf16.mxu1 %v903_v0 }
 0x14b   : > { %v322_v17 = vpop.f32.mrb[4].mxu0  ;;  %645 = vmatmul.mubr.msk.bf16.vlgmr.msra.gmra.mrb[0].mxu1 %vm270_vm1, %v737_v16 }
 0x14c   : > { %v636_v18 = vpop.f32.mrb[5].mxu0  ;;  %650 = vmatprep.mubr.msk.bf16.mxu1 %vm904_vm0, %v903_v0 }
 0x14d   : > { %v325_v19 = vpop.f32.mrb[6].mxu0 }
 0x14e   : > { %v338_v20 = vpack.c.bf16 %v325_v19, %v322_v17  ;;  %v637_v21 = vpop.f32.mrb[7].mxu0 }
 0x150   : > { %649 = vmatpush3.bf16.msra.mxu1 %v338_v20 }
 0x151   : > { %654 = vmatprep.subr.bf16.mxu1 %v903_v0 }
 0x153   : > { %v330_v22 = vpop.f32.mrb[8].mxu0  ;;  %651 = vmatmul.mubr.msk.bf16.vlgmr.msra.gmra.mrb[4].mxu1 %vm270_vm1, %v737_v16 }
 0x154   : > { %v640_v23 = vpop.f32.mrb[9].mxu0  ;;  %656 = vmatprep.mubr.msk.bf16.mxu1 %vm904_vm0, %v903_v0 }
 0x155   : > { %v333_v24 = vpop.f32.mrb[10].mxu0 }
 0x156   : > { %v339_v25 = vpack.c.bf16 %v333_v24, %v330_v22  ;;  %v641_v26 = vpop.f32.mrb[11].mxu0 }
 0x158   : > { %655 = vmatpush3.bf16.msra.mxu1 %v339_v25 }
 0x15b   : > { %657 = vmatmul.mubr.msk.bf16.vlgmr.msra.gmra.mrb[8].mxu1 %vm270_vm1, %v737_v16 }
 0x21e   : > { %v382_v27 = vpop.f32.mrb[0].mxu1 }
 0x21f   : > { %v646_v28 = vpop.f32.mrb[1].mxu1  ;;  %v389_v34 = vsub.f32 %v382_v27, %v251_v31 }
 0x220   : > { %v385_v29 = vpop.f32.mrb[2].mxu1 }
 0x221   : > { %v647_v30 = vpop.f32.mrb[3].mxu1  ;;  %v390_v37 = vsub.f32 %v385_v29, %v252_v32  ;;  %v391_v41 = vmul.f32 %v389_v34, %v389_v34 }
 0x223   : > { %v392_v45 = vmul.f32 %v390_v37, %v390_v37 }
 0x226   : > { %v429_v35 = vpop.f32.mrb[4].mxu1 }
 0x227   : > { %v436_v38 = vsub.f32 %v429_v35, %v253_v33  ;;  %v652_v39 = vpop.f32.mrb[5].mxu1 }
 0x228   : > { %v432_v40 = vpop.f32.mrb[6].mxu1 }
 0x229   : > { %v438_v42 = vmul.f32 %v436_v38, %v436_v38  ;;  %v437_v43 = vsub.f32 %v432_v40, %v254_v36  ;;  %v653_v44 = vpop.f32.mrb[7].mxu1 }
 0x22b   : > { %v440_v46 = vadd.f32 %v438_v42, %v391_v41  ;;  %v439_v47 = vmul.f32 %v437_v43, %v437_v43 }
 0x22d   : > { %v441_v49 = vadd.f32 %v439_v47, %v392_v45 }
 0x22e   : > { %v476_v50 = vpop.f32.mrb[8].mxu1 }
 0x22f   : > { %v483_v52 = vsub.f32 %v476_v50, %v255_v48  ;;  %v658_v53 = vpop.f32.mrb[9].mxu1 }
 0x230   : > { %v479_v54 = vpop.f32.mrb[10].mxu1 }
 0x231   : > { %v485_v55 = vmul.f32 %v483_v52, %v483_v52  ;;  %v484_v56 = vsub.f32 %v479_v54, %v256_v51  ;;  %v659_v57 = vpop.f32.mrb[11].mxu1 }
 0x233   : > { %v487_v58 = vadd.f32 %v485_v55, %v440_v46  ;;  %v486_v59 = vmul.f32 %v484_v56, %v484_v56 }
 0x235   : > { %v488_v60 = vadd.f32 %v486_v59, %v441_v49  ;;  %v489_v61 = vsel %vm270_vm1, %v487_v58, 0.0 }
 0x237   : > { %v490_v62 = vsel %vm270_vm1, %v488_v60, 0.0 }
 0x238   : > { %v491_v63 = vadd.f32 %v490_v62, %v489_v61 }
 0x23a   : > { %v492_v0 = vrot.slane %v491_v63, 4 }
 0x23c   : > { %v493_v1 = vadd.f32 %v492_v0, %v491_v63 }
 0x23e   : > { %v494_v2 = vrot.slane %v493_v1, 2 }
 0x240   : > { %v495_v3 = vadd.f32 %v494_v2, %v493_v1 }
 0x242   : > { %v496_v4 = vrot.slane %v495_v3, 1 }
 0x244   : > { %v497_v5 = vadd.f32 %v496_v4, %v495_v3 }
 0x246   : > { %499 = vst.msk [vmem:[%s243_s12] sm:$0x1] %vm498_vm2, %v497_v5 }
 0x247   : > { %837 = shalt.err (!%p834_p1)
}
 0x248   : > { %s838_s14 = scalar_lea.hbm %s1143_s9, 16  ;;  %s842_s28 = scalar_lea.hbm %s1191_s4, 32 }
 0x249   : > { %p839_p13 = scmp.ne.s32.totalorder %s1143_s9, %s838_s14  ;;  %p843_p4 = scmp.lt.u32.totalorder %s1143_s9, %s1191_s4 }
 0x24a   : > { %p844_p7 = scmp.lt.u32.totalorder %s842_s28, %s838_s14  ;;  %p846_p8 = scmp.lt.u32.totalorder %s838_s14, %s1143_s9 }
 0x24b   : > { %p840_p6 = pnand %p839_p13, %p1205_p0 }
 0x24c   : > { %p845_p11 = por %p844_p7, %p843_p4 }
 0x24d   : > { %p841_p10 = pneg %p840_p6 }
 0x24e   : > { %p847_p2 = por %p846_p8, %p845_p11 }
 0x250   : > { %p848_p3 = pnand %p847_p2, %p841_p10 }
 0x252   : > { %851 = shalt.err (!%p848_p3)
}
 0x253   : > { %673 = dma.vmem_to_hbm [thread:$0]  (%p1205_p0), %s1145_s30, 16, %s1143_s9, %s501_s6  }
 0x254 PF: > { %s525_s11 = sand.u32 1, %s882_s15   ;;  %p1206_p5 = scmp.ne.s32.totalorder %s1196_s22, 0 }
 0x255   : > { %p1207_p9 = scmp.ge.s32.totalorder %s894_s18, 2  ;;  %s526_s21 = scalar_lea.sflag [#allocation4], %s525_s11 }
 0x257   : > { %p687_p12 = pnand %p1207_p9, %p1206_p5 }
 0x259   : > { %877 = dma.done.wait (!%p687_p12), %s526_s21, 16  }
 0x25a   : > { %879 = vsyncadd (!%p687_p12), %s526_s21, 4294967280  ;;  %p18_p1 = scmp.ge.s32.totalorder %s1044_s13, 4   ;;  %s1208_s15 = smov %s886_s16 }
 0x25b   : > { %s1209_s16 = smov %s890_s17  ;;  %s1210_s17 = smov %s1053_s24 }
 0x25c   : > { %s1211_s18 = smov %s1044_s13  ;;  %20 = sbr.rel (!%p18_p1) target bundleno = 6 (0x6), region = 89 }
 0x263   :  { %530 = vsyncpa [#allocation3], 1 }
 0x264   :  { %532 = vsyncpa [#allocation3 + $0x1], 1 }
 0x265   :  { %533 = vsyncpa [#allocation6], 1 }
 0x266   :  { %534 = vsyncpa [#allocation4], 1 }
 0x267   :  { %536 = vsyncpa [#allocation4 + $0x1], 1 }

// kernel: tpu_custom_call.1
= control target key start
LH: loop header
LB: loop body
LE: loop exit
PB: predicated region body
PF: predicated region fallthrough
CT: control target
= control target key end

     0   :  { %9 = vsyncpa [#allocation3], 0  ;;  %s1187_s0 = inlined_call_operand.hbm [shape: f32[2,3,16,16], index: 0, kind: input, shape index: {}]   ;;  %s1188_s1 = inlined_call_operand.hbm [shape: f32[1,3,16,16], index: 1, kind: input, shape index: {}]   ;;  %s1189_s2 = inlined_call_operand.hbm [shape: bf16[16,16], index: 2, kind: input, shape index: {}]   ;;  %s1190_s3 = inlined_call_operand.vmem [shape: bf16[16,16], index: 3, kind: input, shape index: {}]   ;;  %s1191_s4 = inlined_call_operand.hbm [shape: f32[2,1,16], index: 4, kind: output, shape index: {}]  }
   0x1   :  { %11 = vsyncpa [#allocation3 + $0x1], 0 }
   0x2   :  { %12 = vsyncpa [#allocation6], 0 }
   0x3   :  { %13 = vsyncpa [#allocation4], 0 }
   0x4   :  { %15 = vsyncpa [#allocation4 + $0x1], 0  ;;  %s931_s15 = smov 0   ;;  %s933_s16 = smov 0  }
   0x5   :  { %s935_s17 = smov 0   ;;  %s937_s18 = smov 0  }
   0x6 LB: > { %s952_s19 = sadd.s32 4294967295, %s894_s18   ;;  %s598_s20 = sadd.s32 4294967294, %s894_s18   ;;  %s894_s18 = sphi %s937_s18, %s1211_s18   ;;  %s890_s17 = sphi %s935_s17, %s1210_s17   ;;  %s886_s16 = sphi %s933_s16, %s1209_s16   ;;  %s882_s15 = sphi %s931_s15, %s1208_s15  }
   0x7   : > { %p41_p0 = scmp.ne.s32.totalorder %s886_s16, %s882_s15  ;;  %p1192_p1 = scmp.eq.s32.totalorder %s952_s19, 0 }
   0x8   : > { %p134_p3 = scmp.eq.s32.totalorder %s598_s20, 1  ;;  %p599_p5 = scmp.ge.s32.totalorder %s894_s18, 1 }
   0x9   : > { %p961_p4 = por %p1192_p1, %p41_p0  ;;  %p141_p7 = scmp.lt.s32.totalorder %s894_s18, 3 }
   0xa   : > { %p966_p6 = por %p134_p3, %p41_p0  ;;  %s896_s24 = smov [#allocation5]  }
   0xb   : > { %s1195_s21 = scalar_select %p961_p4, 1, 0 }
   0xc   : > { %s1196_s22 = scalar_select %p966_p6, 1, 0 }
   0xd   : > { %p971_p8 = pnand %p599_p5, %p141_p7  ;;  %s153_s25 = sshll.u32 %s896_s24, 4  ;;  %s975_s25 = int_to_ptr.vmem [resolvable:$true] %s153_s25 }
   0xe   : > { %s897_s27 = smov [#allocation7]   ;;  %s738_s5 = scalar_lea.hbm %s1188_s1, 768 }
   0xf   : > { %p675_p9 = pneg %p971_p8  ;;  %s166_s28 = sshll.u32 %s897_s27, 4  ;;  %s986_s28 = int_to_ptr.vmem [resolvable:$true] %s166_s28 }
  0x10   : > { %p739_p12 = scmp.ne.s32.totalorder %s1188_s1, %s738_s5  ;;  %p745_p5 = scmp.lt.u32.totalorder %s738_s5, %s1188_s1 }
  0x11   : > { %p982_p11 = pnand %p675_p9, %p1192_p1 }
  0x13   : > { %p740_p13 = pneg %p982_p11 }
  0x15   : > { %p741_p0 = pnand %p740_p13, %p739_p12 }
  0x17   : > { %p742_p3 = pneg %p741_p0 }
  0x19   : > { %p747_p7 = pnand %p745_p5, %p742_p3 }
  0x1b   : > { %750 = shalt.err (!%p747_p7)
}
  0x1c   : > { %s751_s10 = scalar_lea.vmem %s975_s25, 768  ;;  %p759_p2 = scmp.lt.s32.totalorder %s975_s25, %s975_s25 }
  0x1d   : > { %p752_p9 = scmp.ne.s32.totalorder %s975_s25, %s751_s10  ;;  %p760_p12 = scmp.lt.s32.totalorder %s751_s10, %s751_s10 }
  0x1f   : > { %p754_p10 = pnand %p752_p9, %p740_p13  ;;  %p761_p0 = por %p760_p12, %p759_p2 }
  0x21   : > { %p755_p1 = pneg %p754_p10 }
  0x23   : > { %p762_p6 = pnand %p761_p0, %p755_p1 }
  0x25   : > { %765 = shalt.err (!%p762_p6)
}
  0x26   : > { %s898_s11 = smov 128   ;;  %s899_s12 = smov 8  }
  0x27   : > { %678 = dma.hbm_to_vmem [thread:$0]  (!%p982_p11), %s1188_s1, 768, %s975_s25, [#allocation6], %s898_s11, %s898_s11, %s899_s12  }
  0x28   : > { %s766_s27 = scalar_lea.hbm %s1189_s2, 128 }
  0x29   : > { %p767_p1 = scmp.ne.s32.totalorder %s1189_s2, %s766_s27  ;;  %p773_p10 = scmp.lt.u32.totalorder %s766_s27, %s1189_s2 }
  0x2b   : > { %p769_p2 = pnand %p767_p1, %p740_p13 }
  0x2d   : > { %p770_p6 = pneg %p769_p2 }
  0x2f   : > { %p775_p3 = pnand %p773_p10, %p770_p6 }
  0x31   : > { %778 = shalt.err (!%p775_p3)
}
  0x32   : > { %s779_s25 = scalar_lea.vmem %s986_s28, 128  ;;  %p787_p12 = scmp.lt.s32.totalorder %s986_s28, %s986_s28 }
  0x33   : > { %p780_p5 = scmp.ne.s32.totalorder %s986_s28, %s779_s25  ;;  %p788_p0 = scmp.lt.s32.totalorder %s779_s25, %s779_s25 }
  0x35   : > { %p782_p7 = pnand %p780_p5, %p740_p13  ;;  %p789_p1 = por %p788_p0, %p787_p12 }
  0x37   : > { %p783_p9 = pneg %p782_p7 }
  0x39   : > { %p790_p2 = pnand %p789_p1, %p783_p9 }
  0x3b   : > { %793 = shalt.err (!%p790_p2)
}
  0x3c   : > { %s900_s7 = smov 64   ;;  %s901_s8 = smov 4  }
  0x3d   : > { %681 = dma.hbm_to_vmem [thread:$0]  (!%p982_p11), %s1189_s2, 128, %s986_s28, [#allocation6], %s900_s7, %s900_s7, %s901_s8  }
  0x3e   : > { %s1044_s13 = sadd.s32 1, %s894_s18   ;;  %s28_s20 = sadd.s32 1, %s890_s17 }
  0x3f   : > { %s25_s14 = ssub.s32 %s894_s18, %s1044_s13  ;;  %p35_p6 = scmp.ne.s32.totalorder %s890_s17, %s886_s16 }
  0x40   : > { %p26_p13 = scmp.eq.s32.totalorder %s25_s14, 0  ;;  %p36_p10 = scmp.eq.s32.totalorder %s894_s18, 0 }
  0x41   : > { %p1199_p5 = scmp.eq.s32.totalorder %s952_s19, 1  ;;  %p692_p9 = scmp.lt.s32.totalorder %s894_s18, 2 }
  0x42   : > { %s1053_s24 = scalar_select %p26_p13, %s890_s17, %s28_s20  }
  0x43   : > { %p37_p3 = por %p36_p10, %p35_p6  ;;  %p1057_p7 = por %p1199_p5, %p35_p6 }
  0x44   : > { %s183_s26 = sand.u32 1, %s890_s17   ;;  %s661_s28 = smul.u32 768, %s894_s18 }
  0x45   : > { %s1200_s27 = scalar_select %p1057_p7, 1, 0 }
  0x46   : > { %s660_s29 = smul.u32 48, %s183_s26  ;;  %p1064_p11 = pnand %p692_p9, %p37_p3 }
  0x47   : > { %s1071_s25 = scalar_lea.hbm %s1187_s0, %s661_s28  ;;  %s1075_s9 = scalar_lea.sflag [#allocation3], %s183_s26 }
  0x48   : > { %s187_s7 = scalar_lea.vmem [#allocation2], %s660_s29  ;;  %s794_s10 = scalar_lea.hbm %s1071_s25, 768 }
  0x49   : > { %s194_s8 = sshll.u32 %s187_s7, 4  ;;  %p795_p12 = scmp.ne.s32.totalorder %s1071_s25, %s794_s10  ;;  %s1073_s8 = int_to_ptr.vmem [resolvable:$true] %s194_s8 }
  0x4a   : > { %p796_p0 = pneg %p1064_p11  ;;  %s799_s28 = scalar_lea.hbm %s1187_s0, 1536 }
  0x4b   : > { %p800_p13 = scmp.lt.u32.totalorder %s1071_s25, %s1187_s0  ;;  %p801_p6 = scmp.lt.u32.totalorder %s799_s28, %s794_s10 }
  0x4c   : > { %p797_p1 = pnand %p796_p0, %p795_p12  ;;  %p803_p3 = scmp.lt.u32.totalorder %s794_s10, %s1071_s25 }
  0x4d   : > { %p802_p10 = por %p801_p6, %p800_p13 }
  0x4e   : > { %p798_p2 = pneg %p797_p1 }
  0x4f   : > { %p804_p5 = por %p803_p3, %p802_p10 }
  0x51   : > { %p805_p9 = pnand %p804_p5, %p798_p2 }
  0x53   : > { %808 = shalt.err (!%p805_p9)
}
  0x54   : > { %s809_s26 = scalar_lea.vmem %s1073_s8, 768  ;;  %s902_s29 = smov [#allocation2]  }
  0x55   : > { %p810_p12 = scmp.ne.s32.totalorder %s1073_s8, %s809_s26  ;;  %s814_s7 = sshll.u32 %s902_s29, 4  ;;  %s815_s7 = int_to_ptr.vmem [resolvable:$false] %s814_s7 }
  0x56   : > { %s816_s14 = scalar_lea.vmem %s815_s7, 1536  ;;  %p817_p4 = scmp.lt.s32.totalorder %s1073_s8, %s815_s7 }
  0x57   : > { %p812_p1 = pnand %p810_p12, %p796_p0  ;;  %p818_p13 = scmp.lt.s32.totalorder %s816_s14, %s809_s26 }
  0x59   : > { %p813_p7 = pneg %p812_p1  ;;  %p819_p6 = por %p818_p13, %p817_p4 }
  0x5b   : > { %p820_p10 = pnand %p819_p6, %p813_p7 }
  0x5d   : > { %823 = shalt.err (!%p820_p10)
}
  0x5e   : > { %685 = dma.hbm_to_vmem [thread:$0]  (!%p1064_p11), %s1071_s25, 768, %s1073_s8, %s1075_s9, %s898_s11, %s898_s11, %s899_s12  }
  0x5f   : > { %206 = sbr.rel (%p971_p8) target bundleno = 596 (0x254), region = 36  ;;  %s1109_s10 = sand.u32 (!%p971_p8), 1, %s886_s16  }
  0x60   : > { %s662_s20 = smul.u32 (!%p971_p8), 48, %s1109_s10  ;;  %s209_s28 = scalar_lea.sflag (!%p971_p8), [#allocation3], %s1109_s10 }
  0x61   : > { %p1202_p4 = scmp.ne.s32.totalorder (!%p971_p8), %s1195_s21, 0 }
  0x62   : > { %s212_s5 = scalar_lea.vmem (!%p971_p8), [#allocation2], %s662_s20 }
  0x66   : > { %869 = dma.done.wait (%p1202_p4), %s209_s28, 768  }
  0x67   : > { %871 = vsyncadd (%p1202_p4), %s209_s28, 4294966528  ;;  %p1203_p7 = scmp.eq.s32.totalorder %s952_s19, 0 }
  0x69   : > { %873 = dma.done.wait (%p1203_p7), [#allocation6], 896   ;;  %p1204_p11 = pmov %p1203_p7 }
  0x6a   : > { %v903_v0 = vmov 0.0   ;;  %vm904_vm0 = vmmov 0   ;;  %v736_v1 = vld [vmem:[%s1190_s3] sm:$0xff]   ;;  %v246_v3 = vld [vmem:[%s212_s5 + $0x8] sm:$0xff]  ;;  %vm270_vm1 = vcmask 130048   ;;  %v248_v6 = vld [vmem:[%s212_s5 + $0x18] sm:$0xff] }
  0x6b   : > { %875 = vsyncadd (%p1204_p11), [#allocation6], 4294966400  ;;  %628 = vmatprep.subr.bf16.mxu0 %v903_v0  ;;  %630 = vmatprep.mubr.msk.bf16.mxu0 %vm904_vm0, %v903_v0  ;;  %v245_v2 = vld [vmem:[%s212_s5] sm:$0xff]  ;;  %v247_v5 = vld [vmem:[%s212_s5 + $0x10] sm:$0xff]  ;;  %s615_s21 = sshll.u32 %s952_s19, 4  ;;  %s243_s12 = scalar_lea.vmem [#allocation8], %s1109_s10 }
  0x6c   : > { %642 = vmatprep.subr.bf16.mxu1 %v903_v0  ;;  %644 = vmatprep.mubr.msk.bf16.mxu1 %vm904_vm0, %v903_v0  ;;  %v261_v4 = vpack.c.bf16 %v246_v3, %v245_v2  ;;  %v262_v7 = vpack.c.bf16 %v248_v6, %v247_v5  ;;  %v249_v8 = vld [vmem:[%s212_s5 + $0x20] sm:$0xff]  ;;  %v250_v9 = vld [vmem:[%s212_s5 + $0x28] sm:$0xff]  ;;  %s513_s30 = sshll.u32 %s243_s12, 4  ;;  %vm498_vm2 = vcmask 122880   ;;  %s1143_s9 = scalar_lea.hbm %s1191_s4, %s615_s21  ;;  %s1145_s30 = int_to_ptr.vmem [resolvable:$true] %s513_s30 }
  0x6d   : > { %629 = vmatpush3.bf16.msra.mxu0 %v736_v1  ;;  %v263_v10 = vpack.c.bf16 %v250_v9, %v249_v8  ;;  %v737_v16 = vld [vmem:[#allocation7] sm:$0xff]   ;;  %v251_v31 = vld [vmem:[#allocation5] sm:$0xff]  ;;  %v252_v32 = vld [vmem:[#allocation5 + $0x8] sm:$0xff]  ;;  %s501_s6 = scalar_lea.sflag [#allocation4], %s1109_s10  ;;  %s824_s26 = scalar_lea.vmem %s1145_s30, 16 }
  0x6e   : > { %v253_v33 = vld [vmem:[#allocation5 + $0x10] sm:$0xff]  ;;  %v254_v36 = vld [vmem:[#allocation5 + $0x18] sm:$0xff]  ;;  %v255_v48 = vld [vmem:[#allocation5 + $0x20] sm:$0xff]  ;;  %p825_p8 = scmp.ne.s32.totalorder %s1145_s30, %s824_s26  ;;  %p1205_p0 = scmp.ne.s32.totalorder %s1200_s27, 0 }
  0x6f   : > { %v256_v51 = vld [vmem:[#allocation5 + $0x28] sm:$0xff]  ;;  %s905_s19 = smov [#allocation8]  }
  0x70   : > { %631 = vmatmul.mubr.msk.bf16.vlgmr.msra.gmra.mrb[0].mxu0 %vm270_vm1, %v261_v4  ;;  %p826_p2 = pnand %p825_p8, %p1205_p0  ;;  %s828_s29 = sshll.u32 %s905_s19, 4  ;;  %s829_s29 = int_to_ptr.vmem [resolvable:$false] %s828_s29 }
  0x71   : > { %634 = vmatprep.mubr.msk.bf16.mxu0 %vm904_vm0, %v903_v0  ;;  %s830_s7 = scalar_lea.vmem %s829_s29, 32  ;;  %p831_p5 = scmp.lt.s32.totalorder %s1145_s30, %s829_s29 }
  0x72   : > { %p827_p3 = pneg %p826_p2  ;;  %p832_p9 = scmp.lt.s32.totalorder %s830_s7, %s824_s26 }
  0x74   : > { %p833_p12 = por %p832_p9, %p831_p5 }
  0x76   : > { %p834_p1 = pnand %p833_p12, %p827_p3 }
  0x78   : > { %635 = vmatmul.mubr.msk.bf16.gmra.mrb[4].mxu0 %vm270_vm1, %v262_v7 }
  0x79   : > { %638 = vmatprep.mubr.msk.bf16.mxu0 %vm904_vm0, %v903_v0 }
  0x80   : > { %639 = vmatmul.mubr.msk.bf16.gmra.mrb[8].mxu0 %vm270_vm1, %v263_v10 }
 0x143   : > { %v314_v11 = vpop.f32.mrb[0].mxu0 }
 0x144   : > { %v632_v12 = vpop.f32.mrb[1].mxu0 }
 0x145   : > { %v317_v13 = vpop.f32.mrb[2].mxu0 }
 0x146   : > { %v337_v14 = vpack.c.bf16 %v317_v13, %v314_v11  ;;  %v633_v15 = vpop.f32.mrb[3].mxu0 }
 0x148   : > { %643 = vmatpush3.bf16.msra.mxu1 %v337_v14 }
 0x149   : > { %648 = vmatprep.subr.bf16.mxu1 %v903_v0 }
 0x14b   : > { %v322_v17 = vpop.f32.mrb[4].mxu0  ;;  %645 = vmatmul.mubr.msk.bf16.vlgmr.msra.gmra.mrb[0].mxu1 %vm270_vm1, %v737_v16 }
 0x14c   : > { %v636_v18 = vpop.f32.mrb[5].mxu0  ;;  %650 = vmatprep.mubr.msk.bf16.mxu1 %vm904_vm0, %v903_v0 }
 0x14d   : > { %v325_v19 = vpop.f32.mrb[6].mxu0 }
 0x14e   : > { %v338_v20 = vpack.c.bf16 %v325_v19, %v322_v17  ;;  %v637_v21 = vpop.f32.mrb[7].mxu0 }
 0x150   : > { %649 = vmatpush3.bf16.msra.mxu1 %v338_v20 }
 0x151   : > { %654 = vmatprep.subr.bf16.mxu1 %v903_v0 }
 0x153   : > { %v330_v22 = vpop.f32.mrb[8].mxu0  ;;  %651 = vmatmul.mubr.msk.bf16.vlgmr.msra.gmra.mrb[4].mxu1 %vm270_vm1, %v737_v16 }
 0x154   : > { %v640_v23 = vpop.f32.mrb[9].mxu0  ;;  %656 = vmatprep.mubr.msk.bf16.mxu1 %vm904_vm0, %v903_v0 }
 0x155   : > { %v333_v24 = vpop.f32.mrb[10].mxu0 }
 0x156   : > { %v339_v25 = vpack.c.bf16 %v333_v24, %v330_v22  ;;  %v641_v26 = vpop.f32.mrb[11].mxu0 }
 0x158   : > { %655 = vmatpush3.bf16.msra.mxu1 %v339_v25 }
 0x15b   : > { %657 = vmatmul.mubr.msk.bf16.vlgmr.msra.gmra.mrb[8].mxu1 %vm270_vm1, %v737_v16 }
 0x21e   : > { %v382_v27 = vpop.f32.mrb[0].mxu1 }
 0x21f   : > { %v646_v28 = vpop.f32.mrb[1].mxu1  ;;  %v389_v34 = vsub.f32 %v382_v27, %v251_v31 }
 0x220   : > { %v385_v29 = vpop.f32.mrb[2].mxu1 }
 0x221   : > { %v647_v30 = vpop.f32.mrb[3].mxu1  ;;  %v390_v37 = vsub.f32 %v385_v29, %v252_v32  ;;  %v391_v41 = vmul.f32 %v389_v34, %v389_v34 }
 0x223   : > { %v392_v45 = vmul.f32 %v390_v37, %v390_v37 }
 0x226   : > { %v429_v35 = vpop.f32.mrb[4].mxu1 }
 0x227   : > { %v436_v38 = vsub.f32 %v429_v35, %v253_v33  ;;  %v652_v39 = vpop.f32.mrb[5].mxu1 }
 0x228   : > { %v432_v40 = vpop.f32.mrb[6].mxu1 }
 0x229   : > { %v438_v42 = vmul.f32 %v436_v38, %v436_v38  ;;  %v437_v43 = vsub.f32 %v432_v40, %v254_v36  ;;  %v653_v44 = vpop.f32.mrb[7].mxu1 }
 0x22b   : > { %v440_v46 = vadd.f32 %v438_v42, %v391_v41  ;;  %v439_v47 = vmul.f32 %v437_v43, %v437_v43 }
 0x22d   : > { %v441_v49 = vadd.f32 %v439_v47, %v392_v45 }
 0x22e   : > { %v476_v50 = vpop.f32.mrb[8].mxu1 }
 0x22f   : > { %v483_v52 = vsub.f32 %v476_v50, %v255_v48  ;;  %v658_v53 = vpop.f32.mrb[9].mxu1 }
 0x230   : > { %v479_v54 = vpop.f32.mrb[10].mxu1 }
 0x231   : > { %v485_v55 = vmul.f32 %v483_v52, %v483_v52  ;;  %v484_v56 = vsub.f32 %v479_v54, %v256_v51  ;;  %v659_v57 = vpop.f32.mrb[11].mxu1 }
 0x233   : > { %v487_v58 = vadd.f32 %v485_v55, %v440_v46  ;;  %v486_v59 = vmul.f32 %v484_v56, %v484_v56 }
 0x235   : > { %v488_v60 = vadd.f32 %v486_v59, %v441_v49  ;;  %v489_v61 = vsel %vm270_vm1, %v487_v58, 0.0 }
 0x237   : > { %v490_v62 = vsel %vm270_vm1, %v488_v60, 0.0 }
 0x238   : > { %v491_v63 = vadd.f32 %v490_v62, %v489_v61 }
 0x23a   : > { %v492_v0 = vrot.slane %v491_v63, 4 }
 0x23c   : > { %v493_v1 = vadd.f32 %v492_v0, %v491_v63 }
 0x23e   : > { %v494_v2 = vrot.slane %v493_v1, 2 }
 0x240   : > { %v495_v3 = vadd.f32 %v494_v2, %v493_v1 }
 0x242   : > { %v496_v4 = vrot.slane %v495_v3, 1 }
 0x244   : > { %v497_v5 = vadd.f32 %v496_v4, %v495_v3 }
 0x246   : > { %499 = vst.msk [vmem:[%s243_s12] sm:$0x1] %vm498_vm2, %v497_v5 }
 0x247   : > { %837 = shalt.err (!%p834_p1)
}
 0x248   : > { %s838_s14 = scalar_lea.hbm %s1143_s9, 16  ;;  %s842_s28 = scalar_lea.hbm %s1191_s4, 32 }
 0x249   : > { %p839_p13 = scmp.ne.s32.totalorder %s1143_s9, %s838_s14  ;;  %p843_p4 = scmp.lt.u32.totalorder %s1143_s9, %s1191_s4 }
 0x24a   : > { %p844_p7 = scmp.lt.u32.totalorder %s842_s28, %s838_s14  ;;  %p846_p8 = scmp.lt.u32.totalorder %s838_s14, %s1143_s9 }
 0x24b   : > { %p840_p6 = pnand %p839_p13, %p1205_p0 }
 0x24c   : > { %p845_p11 = por %p844_p7, %p843_p4 }
 0x24d   : > { %p841_p10 = pneg %p840_p6 }
 0x24e   : > { %p847_p2 = por %p846_p8, %p845_p11 }
 0x250   : > { %p848_p3 = pnand %p847_p2, %p841_p10 }
 0x252   : > { %851 = shalt.err (!%p848_p3)
}
 0x253   : > { %673 = dma.vmem_to_hbm [thread:$0]  (%p1205_p0), %s1145_s30, 16, %s1143_s9, %s501_s6  }
 0x254 PF: > { %s525_s11 = sand.u32 1, %s882_s15   ;;  %p1206_p5 = scmp.ne.s32.totalorder %s1196_s22, 0 }
 0x255   : > { %p1207_p9 = scmp.ge.s32.totalorder %s894_s18, 2  ;;  %s526_s21 = scalar_lea.sflag [#allocation4], %s525_s11 }
 0x257   : > { %p687_p12 = pnand %p1207_p9, %p1206_p5 }
 0x259   : > { %877 = dma.done.wait (!%p687_p12), %s526_s21, 16  }
 0x25a   : > { %879 = vsyncadd (!%p687_p12), %s526_s21, 4294967280  ;;  %p18_p1 = scmp.ge.s32.totalorder %s1044_s13, 4   ;;  %s1208_s15 = smov %s886_s16 }
 0x25b   : > { %s1209_s16 = smov %s890_s17  ;;  %s1210_s17 = smov %s1053_s24 }
 0x25c   : > { %s1211_s18 = smov %s1044_s13  ;;  %20 = sbr.rel (!%p18_p1) target bundleno = 6 (0x6), region = 89 }
 0x263   :  { %530 = vsyncpa [#allocation3], 1 }
 0x264   :  { %532 = vsyncpa [#allocation3 + $0x1], 1 }
 0x265   :  { %533 = vsyncpa [#allocation6], 1 }
 0x266   :  { %534 = vsyncpa [#allocation4], 1 }
 0x267   :  { %536 = vsyncpa [#allocation4 + $0x1], 1 }

</bundles_post_ra>
